<compile_context>
chip_gen: v6e
topology: v6e:2x2x1
jax: 0.10.0
libtpu: 0.0.40
codegen_flags: <defaults>
</compile_context>

<pallas_src>
import functools

import jax
import jax.numpy as jnp
from jax.experimental import pallas as pl
from jax.experimental.pallas import tpu as pltpu

# BatchType enum from the reference code base
SINGLE, HEAD_BATCH, TAIL_BATCH = 0, 1, 2

_VMEM_LIMIT = 32 * 1024 * 1024      # scoped-VMEM headroom, safe on v5e/v6e/v7x
_TILE_BUDGET = 4 * 1024 * 1024      # target bytes for the streamed block of one tile


def _pick_tile_b(B, bytes_per_batch_row, budget=_TILE_BUDGET, cap=1024):
    """Largest multiple-of-8 divisor of B whose streamed tile fits the budget."""
    if B <= 8:
        return B
    best = None
    tb = 8
    while tb <= min(B, cap):
        if B % tb == 0 and tb * bytes_per_batch_row <= budget:
            best = tb
        tb += 8
    if best is not None:
        return best
    tb = 8
    while tb <= B:                  # fall back: smallest multiple-of-8 divisor
        if B % tb == 0:
            return tb
        tb += 8
    return B                        # no usable divisor: single whole-array tile


def _compiler_params():
    return pltpu.CompilerParams(
        dimension_semantics=("parallel",),   # shard batch tiles across TCs on v7x
        vmem_limit_bytes=_VMEM_LIMIT,
    )


def _rel_mlp(r, w1t, b1, w2t, b2):
    """rel_MLP: Linear(D, D//2) -> ReLU -> Linear(D//2, D) -> ReLU (dropout = id)."""
    x = jnp.dot(r, w1t, preferred_element_type=jnp.float32) + b1
    x = jnp.maximum(x, 0.0)
    x = jnp.dot(x, w2t, preferred_element_type=jnp.float32) + b2
    return jnp.maximum(x, 0.0)


# ---------------------------------------------------------------------------
# Kernels
# ---------------------------------------------------------------------------

def _single_kernel(h_ref, r_ref, t_ref, w1_ref, b1_ref, w2_ref, b2_ref, out_ref):
    # h, r, t: (TILE_B, D); out: (TILE_B, 1)
    r = _rel_mlp(r_ref[...].astype(jnp.float32),
                 w1_ref[...], b1_ref[...], w2_ref[...], b2_ref[...])
    prod = h_ref[...].astype(jnp.float32) * r * t_ref[...].astype(jnp.float32)
    out_ref[...] = jnp.sum(prod, axis=1, keepdims=True)


def _mlp_prod_kernel(r_ref, pos_ref, w1_ref, b1_ref, w2_ref, b2_ref, out_ref):
    # rp = rel_MLP(r) * pos, computed once per positive row (hoisted out of the
    # negative-scoring hot loop).  r, pos, out: (TILE_B, D).
    r = _rel_mlp(r_ref[...].astype(jnp.float32),
                 w1_ref[...], b1_ref[...], w2_ref[...], b2_ref[...])
    out_ref[...] = r * pos_ref[...].astype(jnp.float32)


def _neg_score_kernel(neg_size, rp_ref, neg_ref, out_ref):
    # rp:  (TILE_B, D) f32
    # neg: (TILE_B * neg, D), row layout = b * neg + n (repeat_interleave pairing)
    # out: (TILE_B, neg)
    # Pure streaming multiply-reduce: no rel_MLP and no (TILE_B, neg, D)
    # broadcast -- small static unroll over the negative index with strided
    # sublane loads.
    rp = rp_ref[...].astype(jnp.float32)
    tile_b = rp.shape[0]
    cols = []
    for n in range(neg_size):
        neg_n = neg_ref[pl.ds(n, tile_b, stride=neg_size), :].astype(jnp.float32)
        cols.append(jnp.sum(neg_n * rp, axis=1, keepdims=True))    # (TILE_B, 1)
    out_ref[...] = jnp.concatenate(cols, axis=1)


# ---------------------------------------------------------------------------
# pallas_call wrappers
# ---------------------------------------------------------------------------

def _weight_specs(D):
    const = lambda i: (0, 0)                 # resident across the whole grid
    return [
        pl.BlockSpec((D, D // 2), const),    # W1^T
        pl.BlockSpec((1, D // 2), const),    # b1
        pl.BlockSpec((D // 2, D), const),    # W2^T
        pl.BlockSpec((1, D), const),         # b2
    ]


def _weight_bytes(D):
    return (D * (D // 2) * 2 + D // 2 + D) * 4


def _single_scores(h, r, t, w1t, b1, w2t, b2, tile_b):
    B, D = r.shape
    it = jnp.dtype(h.dtype).itemsize
    if tile_b is None:
        tile_b = _pick_tile_b(B, 3 * D * it)
    assert B % tile_b == 0
    row = lambda i: (i, 0)
    cost = pl.CostEstimate(
        flops=2 * B * D * D + 4 * B * D,
        transcendentals=0,
        bytes_accessed=3 * B * D * it + _weight_bytes(D) + B * 4,
    )
    out = pl.pallas_call(
        _single_kernel,
        out_shape=jax.ShapeDtypeStruct((B, 1), jnp.float32),
        grid=(B // tile_b,),
        in_specs=[pl.BlockSpec((tile_b, D), row),
                  pl.BlockSpec((tile_b, D), row),
                  pl.BlockSpec((tile_b, D), row)] + _weight_specs(D),
        out_specs=pl.BlockSpec((tile_b, 1), row),
        compiler_params=_compiler_params(),
        cost_estimate=cost,
    )(h, r, t, w1t, b1, w2t, b2)
    return out[:, 0]                          # (B,) like torch .sum(dim=1)


def _rel_times_pos(r, pos, w1t, b1, w2t, b2, tile_b):
    """rp = rel_MLP(r) * pos as a small gridded pallas_call (weights resident)."""
    B, D = r.shape
    it = jnp.dtype(r.dtype).itemsize
    if tile_b is None:
        tile_b = _pick_tile_b(B, 2 * D * it + D * 4)
    assert B % tile_b == 0
    row = lambda i: (i, 0)
    cost = pl.CostEstimate(
        flops=2 * B * D * D + 3 * B * D,
        transcendentals=0,
        bytes_accessed=2 * B * D * it + B * D * 4 + _weight_bytes(D),
    )
    return pl.pallas_call(
        _mlp_prod_kernel,
        out_shape=jax.ShapeDtypeStruct((B, D), jnp.float32),
        grid=(B // tile_b,),
        in_specs=[pl.BlockSpec((tile_b, D), row),
                  pl.BlockSpec((tile_b, D), row)] + _weight_specs(D),
        out_specs=pl.BlockSpec((tile_b, D), row),
        compiler_params=_compiler_params(),
        cost_estimate=cost,
    )(r, pos, w1t, b1, w2t, b2)


def _neg_scores(rp, neg_ent, neg_size, tile_b):
    B, D = rp.shape
    it = jnp.dtype(neg_ent.dtype).itemsize
    if tile_b is None:
        tile_b = _pick_tile_b(B, neg_size * D * it)
    assert B % tile_b == 0
    cost = pl.CostEstimate(
        flops=2 * B * neg_size * D,
        transcendentals=0,
        bytes_accessed=B * neg_size * D * it + B * D * 4 + B * neg_size * 4,
    )
    return pl.pallas_call(
        functools.partial(_neg_score_kernel, neg_size),
        out_shape=jax.ShapeDtypeStruct((B, neg_size), jnp.float32),
        grid=(B // tile_b,),
        in_specs=[pl.BlockSpec((tile_b, D), lambda i: (i, 0)),
                  pl.BlockSpec((tile_b * neg_size, D), lambda i: (i, 0))],
        out_specs=pl.BlockSpec((tile_b, neg_size), lambda i: (i, 0)),
        compiler_params=_compiler_params(),
        cost_estimate=cost,
    )(rp, neg_ent)


def distmult_decoder(sample, batch_type, params, *, stream_dtype=None, tile_b=None):
    """Pallas implementation of DistMultDecoder.forward (eval mode).

    params: (w1, b1, w2, b2) in PyTorch nn.Linear layout: w1 (D//2, D), w2 (D, D//2).
    stream_dtype: optionally cast the streamed h/r/t tensors (e.g. jnp.bfloat16)
      to halve HBM traffic; math is always done in f32 inside the kernels.
    tile_b: optional batch-tile override (must divide B); None = auto-pick.
    """
    h, r, t = sample
    if stream_dtype is not None:
        h = h.astype(stream_dtype)
        r = r.astype(stream_dtype)
        t = t.astype(stream_dtype)
    w1, b1, w2, b2 = params
    w1t = jnp.transpose(w1).astype(jnp.float32)       # (D,    D//2)
    w2t = jnp.transpose(w2).astype(jnp.float32)       # (D//2, D)
    b1_2d = b1.reshape(1, -1).astype(jnp.float32)
    b2_2d = b2.reshape(1, -1).astype(jnp.float32)
    B = r.shape[0]

    if batch_type == SINGLE:
        return _single_scores(h, r, t, w1t, b1_2d, w2t, b2_2d, tile_b)
    elif batch_type == HEAD_BATCH:
        neg_size = h.shape[0] // B
        rp = _rel_times_pos(r, t, w1t, b1_2d, w2t, b2_2d, tile_b)   # rel_MLP(r) * t
        return _neg_scores(rp, h, neg_size, tile_b)                 # (B, neg)
    elif batch_type == TAIL_BATCH:
        neg_size = t.shape[0] // B
        rp = _rel_times_pos(r, h, w1t, b1_2d, w2t, b2_2d, tile_b)   # h * rel_MLP(r)
        return _neg_scores(rp, t, neg_size, tile_b)                 # (B, neg)
    else:
        raise ValueError("batch_type %s not supported" % batch_type)


if __name__ == "__main__":
    key = jax.random.PRNGKey(0)
    h_dim = 128
    B = 32
    neg = 4
    tile_b = 8                    # force a multi-step grid in this small demo

    k = jax.random.split(key, 8)
    # deterministic synthetic parameters (shapes from nn.Linear in __init__)
    w1 = jax.random.normal(k[0], (h_dim // 2, h_dim), jnp.float32) / jnp.sqrt(h_dim)
    b1 = jax.random.normal(k[1], (h_dim // 2,), jnp.float32) * 0.01
    w2 = jax.random.normal(k[2], (h_dim, h_dim // 2), jnp.float32) / jnp.sqrt(h_dim // 2)
    b2 = jax.random.normal(k[3], (h_dim,), jnp.float32) * 0.01
    params = (w1, b1, w2, b2)

    h_pos = jax.random.normal(k[4], (B, h_dim), jnp.float32)
    r_pos = jax.random.normal(k[5], (B, h_dim), jnp.float32)
    t_pos = jax.random.normal(k[6], (B, h_dim), jnp.float32)
    ent_neg = jax.random.normal(k[7], (B * neg, h_dim), jnp.float32)

    # run the Pallas kernels for all three batch types (tiled grid path)
    out_single = distmult_decoder((h_pos, r_pos, t_pos), SINGLE, params, tile_b=tile_b)
    out_head = distmult_decoder((ent_neg, r_pos, t_pos), HEAD_BATCH, params, tile_b=tile_b)
    out_tail = distmult_decoder((h_pos, r_pos, ent_neg), TAIL_BATCH, params, tile_b=tile_b)
    # auto-tiled path and bf16-streaming path (HBM-bandwidth optimization)
    out_tail_auto = distmult_decoder((h_pos, r_pos, ent_neg), TAIL_BATCH, params)
    out_tail_bf16 = distmult_decoder((h_pos, r_pos, ent_neg), TAIL_BATCH, params,
                                     stream_dtype=jnp.bfloat16, tile_b=tile_b)
    jax.block_until_ready((out_single, out_head, out_tail, out_tail_auto, out_tail_bf16))

    # pure-JAX reference check
    def ref_mlp(r):
        x = jnp.maximum(r @ w1.T + b1, 0.0)
        return jnp.maximum(x @ w2.T + b2, 0.0)

    rm = ref_mlp(r_pos)
    ref_single = jnp.sum(h_pos * rm * t_pos, axis=1)
    ref_head = jnp.sum(ent_neg * jnp.repeat(rm * t_pos, neg, axis=0),
                       axis=1).reshape(B, neg)
    ref_tail = jnp.sum(ent_neg * jnp.repeat(h_pos * rm, neg, axis=0),
                       axis=1).reshape(B, neg)

    assert out_single.shape == (B,)
    assert out_head.shape == (B, neg) and out_tail.shape == (B, neg)
    assert jnp.allclose(out_single, ref_single, rtol=1e-3, atol=1e-3)
    assert jnp.allclose(out_head, ref_head, rtol=1e-3, atol=1e-3)
    assert jnp.allclose(out_tail, ref_tail, rtol=1e-3, atol=1e-3)
    assert jnp.allclose(out_tail_auto, ref_tail, rtol=1e-3, atol=1e-3)
    assert jnp.allclose(out_tail_bf16, ref_tail, rtol=5e-2, atol=2e-1)

    print("KERNEL_OK")
</pallas_src>

<mosaic_0001>
module attributes {stable_mosaic.version = 11 : i64} {
  func.func @_single_kernel(%arg0: i32, %arg1: memref<8x128xf32, #tpu.memory_space<vmem>>, %arg2: memref<8x128xf32, #tpu.memory_space<vmem>>, %arg3: memref<8x128xf32, #tpu.memory_space<vmem>>, %arg4: memref<128x64xf32, #tpu.memory_space<vmem>>, %arg5: memref<1x64xf32, #tpu.memory_space<vmem>>, %arg6: memref<64x128xf32, #tpu.memory_space<vmem>>, %arg7: memref<1x128xf32, #tpu.memory_space<vmem>>, %arg8: memref<8x1xf32, #tpu.memory_space<vmem>>) attributes {dimension_semantics = [#tpu.dimension_semantics<parallel>], iteration_bounds = array<i64: 4>, scalar_prefetch = 0 : i64, scratch_operands = 0 : i64, tpu.core_type = #tpu.core_type<tc>, window_params = [{transform_indices = @transform_0, window_bounds = array<i64: 8, 128>}, {transform_indices = @transform_1, window_bounds = array<i64: 8, 128>}, {transform_indices = @transform_2, window_bounds = array<i64: 8, 128>}, {pipeline_mode = #tpu.pipeline_mode<synchronous>, transform_indices = @transform_3, window_bounds = array<i64: 128, 64>}, {pipeline_mode = #tpu.pipeline_mode<synchronous>, transform_indices = @transform_4, window_bounds = array<i64: 1, 64>}, {pipeline_mode = #tpu.pipeline_mode<synchronous>, transform_indices = @transform_5, window_bounds = array<i64: 64, 128>}, {pipeline_mode = #tpu.pipeline_mode<synchronous>, transform_indices = @transform_6, window_bounds = array<i64: 1, 128>}, {transform_indices = @transform_7, window_bounds = array<i64: 8, 1>}]} {
    %c0 = arith.constant 0 : index
    %c0_0 = arith.constant 0 : index
    %0 = vector.load %arg2[%c0, %c0_0] : memref<8x128xf32, #tpu.memory_space<vmem>>, vector<8x128xf32>
    %c0_1 = arith.constant 0 : index
    %c0_2 = arith.constant 0 : index
    %1 = vector.load %arg4[%c0_1, %c0_2] : memref<128x64xf32, #tpu.memory_space<vmem>>, vector<128x64xf32>
    %c0_3 = arith.constant 0 : index
    %c0_4 = arith.constant 0 : index
    %2 = vector.load %arg5[%c0_3, %c0_4] : memref<1x64xf32, #tpu.memory_space<vmem>>, vector<1x64xf32>
    %c0_5 = arith.constant 0 : index
    %c0_6 = arith.constant 0 : index
    %3 = vector.load %arg6[%c0_5, %c0_6] : memref<64x128xf32, #tpu.memory_space<vmem>>, vector<64x128xf32>
    %c0_7 = arith.constant 0 : index
    %c0_8 = arith.constant 0 : index
    %4 = vector.load %arg7[%c0_7, %c0_8] : memref<1x128xf32, #tpu.memory_space<vmem>>, vector<1x128xf32>
    %cst = arith.constant dense<0.000000e+00> : vector<8x64xf32>
    %5 = tpu.matmul %0, %1, %cst {dimension_numbers = #tpu.dot_dimension_numbers<[1], [0], [0], [1], [0, 0, 1, 1], [], []>} : vector<8x128xf32>, vector<128x64xf32>, vector<8x64xf32> -> vector<8x64xf32>
    %6 = vector.broadcast %2 : vector<1x64xf32> to vector<8x64xf32>
    %7 = arith.addf %5, %6 : vector<8x64xf32>
    %cst_9 = arith.constant 0.000000e+00 : f32
    %8 = vector.broadcast %cst_9 : f32 to vector<8x64xf32>
    %9 = arith.maximumf %7, %8 : vector<8x64xf32>
    %cst_10 = arith.constant dense<0.000000e+00> : vector<8x128xf32>
    %10 = tpu.matmul %9, %3, %cst_10 {dimension_numbers = #tpu.dot_dimension_numbers<[1], [0], [0], [1], [0, 0, 1, 1], [], []>} : vector<8x64xf32>, vector<64x128xf32>, vector<8x128xf32> -> vector<8x128xf32>
    %11 = vector.broadcast %4 : vector<1x128xf32> to vector<8x128xf32>
    %12 = arith.addf %10, %11 : vector<8x128xf32>
    %cst_11 = arith.constant 0.000000e+00 : f32
    %13 = vector.broadcast %cst_11 : f32 to vector<8x128xf32>
    %14 = arith.maximumf %12, %13 : vector<8x128xf32>
    %c0_12 = arith.constant 0 : index
    %c0_13 = arith.constant 0 : index
    %15 = vector.load %arg1[%c0_12, %c0_13] : memref<8x128xf32, #tpu.memory_space<vmem>>, vector<8x128xf32>
    %16 = arith.mulf %15, %14 : vector<8x128xf32>
    %c0_14 = arith.constant 0 : index
    %c0_15 = arith.constant 0 : index
    %17 = vector.load %arg3[%c0_14, %c0_15] : memref<8x128xf32, #tpu.memory_space<vmem>>, vector<8x128xf32>
    %18 = arith.mulf %16, %17 : vector<8x128xf32>
    %cst_16 = arith.constant dense<0.000000e+00> : vector<8xf32>
    %19 = vector.multi_reduction <add>, %18, %cst_16 [1] : vector<8x128xf32> to vector<8xf32>
    %20 = vector.shape_cast %19 : vector<8xf32> to vector<8x1xf32>
    %c0_17 = arith.constant 0 : index
    %c0_18 = arith.constant 0 : index
    %21 = vector.load %arg8[%c0_17, %c0_18] : memref<8x1xf32, #tpu.memory_space<vmem>>, vector<8x1xf32>
    tpu.vector_store %arg8[%c0_17, %c0_18], %20 {strides = array<i32>} : memref<8x1xf32, #tpu.memory_space<vmem>>, vector<8x1xf32>,
    return
  }
  func.func @transform_0(%arg0: i32) -> (i32, i32) {
    %c0_i32 = arith.constant 0 : i32
    %c0_i32_0 = arith.constant 0 : i32
    return %arg0, %c0_i32 : i32, i32
  }
  func.func @transform_1(%arg0: i32) -> (i32, i32) {
    %c0_i32 = arith.constant 0 : i32
    %c0_i32_0 = arith.constant 0 : i32
    return %arg0, %c0_i32 : i32, i32
  }
  func.func @transform_2(%arg0: i32) -> (i32, i32) {
    %c0_i32 = arith.constant 0 : i32
    %c0_i32_0 = arith.constant 0 : i32
    return %arg0, %c0_i32 : i32, i32
  }
  func.func @transform_3(%arg0: i32) -> (i32, i32) {
    %c0_i32 = arith.constant 0 : i32
    %c0_i32_0 = arith.constant 0 : i32
    %c0_i32_1 = arith.constant 0 : i32
    return %c0_i32, %c0_i32_0 : i32, i32
  }
  func.func @transform_4(%arg0: i32) -> (i32, i32) {
    %c0_i32 = arith.constant 0 : i32
    %c0_i32_0 = arith.constant 0 : i32
    %c0_i32_1 = arith.constant 0 : i32
    return %c0_i32, %c0_i32_0 : i32, i32
  }
  func.func @transform_5(%arg0: i32) -> (i32, i32) {
    %c0_i32 = arith.constant 0 : i32
    %c0_i32_0 = arith.constant 0 : i32
    %c0_i32_1 = arith.constant 0 : i32
    return %c0_i32, %c0_i32_0 : i32, i32
  }
  func.func @transform_6(%arg0: i32) -> (i32, i32) {
    %c0_i32 = arith.constant 0 : i32
    %c0_i32_0 = arith.constant 0 : i32
    %c0_i32_1 = arith.constant 0 : i32
    return %c0_i32, %c0_i32_0 : i32, i32
  }
  func.func @transform_7(%arg0: i32) -> (i32, i32) {
    %c0_i32 = arith.constant 0 : i32
    %c0_i32_0 = arith.constant 0 : i32
    return %arg0, %c0_i32 : i32, i32
  }
}

</mosaic_0001>

<bundles_post_ra>
// kernel: tpu_custom_call.1
= control target key start
LH: loop header
LB: loop body
LE: loop exit
PB: predicated region body
PF: predicated region fallthrough
CT: control target
= control target key end

     0   :  { %s732_s24 = smov 0   ;;  %s869_s0 = inlined_call_operand.vmem [shape: f32[32,128], index: 0, kind: input, shape index: {}]   ;;  %s870_s1 = inlined_call_operand.vmem [shape: f32[32,128], index: 1, kind: input, shape index: {}]   ;;  %s871_s2 = inlined_call_operand.vmem [shape: f32[32,128], index: 2, kind: input, shape index: {}]   ;;  %s872_s3 = inlined_call_operand.vmem [shape: f32[128,64], index: 3, kind: input, shape index: {}]   ;;  %s873_s4 = inlined_call_operand.vmem [shape: f32[1,64], index: 4, kind: input, shape index: {}]   ;;  %s874_s5 = inlined_call_operand.vmem [shape: f32[64,128], index: 5, kind: input, shape index: {}]   ;;  %s875_s6 = inlined_call_operand.vmem [shape: f32[1,128], index: 6, kind: input, shape index: {}]   ;;  %s876_s7 = inlined_call_operand.vmem [shape: f32[32,1], index: 7, kind: output, shape index: {}]  }
   0x1 LB: > { %s578_s25 = sadd.s32 4294967295, %s688_s24   ;;  %p582_p0 = scmp.ge.s32.totalorder %s688_s24, 1  ;;  %s688_s24 = sphi %s732_s24, %s17_s24  }
   0x2   : > { %p254_p1 = scmp.lt.s32.totalorder %s688_s24, 5 }
   0x4   : > { %p255_p2 = pnand %p582_p0, %p254_p1 }
   0x5   : > { %p292_p3 = scmp.lt.s32.totalorder (!%p255_p2), %s578_s25, 3 }
   0x6   : > { %258 = sbr.rel (%p255_p2) target bundleno = 581 (0x245), region = 48 }
   0xb   : > { %v324_v0 = vld [vmem:[%s872_s3 + $0x78] sm:$0xff]  ;;  %v690_v1 = vmov 0.0   ;;  %v323_v2 = vld [vmem:[%s872_s3 + $0x70] sm:$0xff]  ;;  %vm691_vm0 = vmmov 0   ;;  %v322_v3 = vld [vmem:[%s872_s3 + $0x68] sm:$0xff]  ;;  %s878_s25 = smov (!%p292_p3, %s578_s25), 3 }
   0xc   : > { %618 = vmatprep.subr.mxu0 %v690_v1  ;;  %650 = vmatprep.mubr.msk.f32.mxu0 %vm691_vm0, %v690_v1  ;;  %v321_v4 = vld [vmem:[%s872_s3 + $0x60] sm:$0xff]  ;;  %v333_v5 = vld [vmem:[%s874_s5 + $0x38] sm:$0xff]  ;;  %v332_v6 = vld [vmem:[%s874_s5 + $0x30] sm:$0xff]  ;;  %s818_s18 = sshll.u32 %s878_s25, 3  ;;  %vm418_vm1 = vcmask 523264   ;;  %vm499_vm2 = vcmask 7168  }
   0xd   : > { %619 = vmatpush3.msra.mxu0 %v324_v0  ;;  %653 = vmatprep.subr.mxu1 %v690_v1  ;;  %v320_v7 = vld [vmem:[%s872_s3 + $0x58] sm:$0xff]  ;;  %v331_v8 = vld [vmem:[%s874_s5 + $0x28] sm:$0xff]  ;;  %v319_v9 = vld [vmem:[%s872_s3 + $0x50] sm:$0xff]  ;;  %s299_s27 = scalar_lea.vmem %s870_s1, %s818_s18  ;;  %s295_s19 = scalar_lea.vmem %s869_s0, %s818_s18 }
   0xe   : > { %620 = vmatprep.subr.mxu0 %v690_v1  ;;  %669 = vmatprep.mubr.msk.f32.mxu1 %vm691_vm0, %v690_v1  ;;  %v330_v10 = vld [vmem:[%s874_s5 + $0x20] sm:$0xff]  ;;  %v318_v11 = vld [vmem:[%s872_s3 + $0x48] sm:$0xff]  ;;  %v329_v12 = vld [vmem:[%s874_s5 + $0x18] sm:$0xff]  ;;  %s303_s22 = scalar_lea.vmem %s871_s2, %s818_s18 }
   0xf   : > { %621 = vmatpush3.msra.mxu0 %v323_v2  ;;  %654 = vmatpush3.msra.mxu1 %v333_v5  ;;  %v317_v13 = vld [vmem:[%s872_s3 + $0x40] sm:$0xff]  ;;  %v316_v14 = vld [vmem:[%s872_s3 + $0x38] sm:$0xff]  ;;  %v315_v15 = vld [vmem:[%s872_s3 + $0x30] sm:$0xff] }
  0x10   : > { %622 = vmatprep.subr.mxu0 %v690_v1  ;;  %655 = vmatprep.subr.mxu1 %v690_v1  ;;  %v314_v16 = vld [vmem:[%s872_s3 + $0x28] sm:$0xff]  ;;  %v313_v17 = vld [vmem:[%s872_s3 + $0x20] sm:$0xff]  ;;  %v312_v18 = vld [vmem:[%s872_s3 + $0x18] sm:$0xff] }
  0x11   : > { %623 = vmatpush3.msra.mxu0 %v322_v3  ;;  %656 = vmatpush3.msra.mxu1 %v332_v6  ;;  %v311_v19 = vld [vmem:[%s872_s3 + $0x10] sm:$0xff]  ;;  %v310_v20 = vld [vmem:[%s872_s3 + $0x8] sm:$0xff]  ;;  %v309_v21 = vld [vmem:[%s872_s3] sm:$0xff] }
  0x12   : > { %624 = vmatprep.subr.mxu0 %v690_v1  ;;  %657 = vmatprep.subr.mxu1 %v690_v1  ;;  %v308_v22 = vld [vmem:[%s299_s27] sm:$0xff]  ;;  %v328_v23 = vld [vmem:[%s874_s5 + $0x10] sm:$0xff]  ;;  %v327_v24 = vld [vmem:[%s874_s5 + $0x8] sm:$0xff]  ;;  %s307_s27 = scalar_lea.vmem %s876_s7, %s818_s18 }
  0x13   : > { %625 = vmatpush3.msra.mxu0 %v321_v4  ;;  %658 = vmatpush3.msra.mxu1 %v331_v8  ;;  %v326_v25 = vld [vmem:[%s874_s5] sm:$0xff] }
  0x14   : > { %626 = vmatprep.subr.mxu0 %v690_v1  ;;  %659 = vmatprep.subr.mxu1 %v690_v1  ;;  %v587_v26 = vld [vmem:[%s873_s4] ss:$0 sm:$0xff] }
  0x15   : > { %627 = vmatpush3.msra.mxu0 %v320_v7  ;;  %660 = vmatpush3.msra.mxu1 %v330_v10  ;;  %v588_v31 = vld [vmem:[%s875_s6] ss:$0 sm:$0xff] }
  0x16   : > { %628 = vmatprep.subr.mxu0 %v690_v1  ;;  %661 = vmatprep.subr.mxu1 %v690_v1  ;;  %v493_v35 = vld [vmem:[%s295_s19] sm:$0xff] }
  0x17   : > { %629 = vmatpush3.msra.mxu0 %v319_v9  ;;  %662 = vmatpush3.msra.mxu1 %v329_v12  ;;  %v495_v37 = vld [vmem:[%s303_s22] sm:$0xff] }
  0x18   : > { %630 = vmatprep.subr.mxu0 %v690_v1  ;;  %663 = vmatprep.subr.mxu1 %v690_v1 }
  0x19   : > { %631 = vmatpush3.msra.mxu0 %v318_v11  ;;  %664 = vmatpush3.msra.mxu1 %v328_v23 }
  0x1a   : > { %632 = vmatprep.subr.mxu0 %v690_v1  ;;  %665 = vmatprep.subr.mxu1 %v690_v1 }
  0x1b   : > { %633 = vmatpush3.msra.mxu0 %v317_v13  ;;  %666 = vmatpush3.msra.mxu1 %v327_v24 }
  0x1c   : > { %634 = vmatprep.subr.mxu0 %v690_v1  ;;  %667 = vmatprep.subr.mxu1 %v690_v1 }
  0x1d   : > { %635 = vmatpush3.msra.mxu0 %v316_v14  ;;  %668 = vmatpush3.msra.mxu1 %v326_v25 }
  0x1e   : > { %636 = vmatprep.subr.mxu0 %v690_v1 }
  0x1f   : > { %637 = vmatpush3.msra.mxu0 %v315_v15 }
  0x20   : > { %638 = vmatprep.subr.mxu0 %v690_v1 }
  0x21   : > { %639 = vmatpush3.msra.mxu0 %v314_v16 }
  0x22   : > { %640 = vmatprep.subr.mxu0 %v690_v1 }
  0x23   : > { %641 = vmatpush3.msra.mxu0 %v313_v17 }
  0x24   : > { %642 = vmatprep.subr.mxu0 %v690_v1 }
  0x25   : > { %643 = vmatpush3.msra.mxu0 %v312_v18 }
  0x26   : > { %644 = vmatprep.subr.mxu0 %v690_v1 }
  0x27   : > { %645 = vmatpush3.msra.mxu0 %v311_v19 }
  0x28   : > { %646 = vmatprep.subr.mxu0 %v690_v1 }
  0x29   : > { %647 = vmatpush3.msra.mxu0 %v310_v20 }
  0x2a   : > { %648 = vmatprep.subr.mxu0 %v690_v1 }
  0x2b   : > { %649 = vmatpush3.msra.mxu0 %v309_v21 }
  0x2c   : > { %651 = vmatmul.mubr.f32.vlgmr.msra.gmra.mxu0 %v308_v22 }
  0xec   : > { %v407_v27 = vpop.f32.mrf.mxu0 }
  0xed   : > { %v408_v28 = vadd.f32 %v587_v26, %v407_v27 }
  0xee   : > { %v652_v29 = vpop.f32.mrf.mxu0 }
  0xef   : > { %v411_v30 = vmax.f32 %v408_v28, 0.0 }
  0xf1   : > { %670 = vmatmul.mubr.msk.f32.vlgmr.msra.gmra.mxu1 %vm418_vm1, %v411_v30 }
 0x1b1   : > { %v488_v32 = vpop.f32.mrf.mxu1 }
 0x1b2   : > { %v489_v33 = vadd.f32 %v588_v31, %v488_v32 }
 0x1b3   : > { %v671_v34 = vpop.f32.mrf.mxu1 }
 0x1b4   : > { %v492_v36 = vmax.f32 %v489_v33, 0.0 }
 0x1b6   : > { %v494_v38 = vmul.f32 %v493_v35, %v492_v36 }
 0x1b8   : > { %v496_v39 = vmul.f32 %v495_v37, %v494_v38 }
 0x1ba   : > { %497 = vadd.xlane.f32.xlu0 %v496_v39 }
 0x243   : > { %v498_v40 = vpop.xlane.xlu0 %497 }
 0x244   : > { %500 = vst.msk [vmem:[%s307_s27] sm:$0xff] %vm499_vm2, %v498_v40 }
 0x245 PF: > { %s17_s24 = sadd.s32 1, %s688_s24  }
 0x246   : > { %p14_p4 = scmp.ge.s32.totalorder %s17_s24, 6  }
 0x248   :  { %16 = sbr.rel (!%p14_p4) target bundleno = 1 (0x1), region = 84 }

</bundles_post_ra>
